<compile_context>
chip_gen: v5e
topology: v5e:2x2
jax: 0.10.0
libtpu: 0.0.40
codegen_flags: <defaults>
</compile_context>

<pallas_src>
import jax
import jax.numpy as jnp
from jax.experimental import pallas as pl
from jax.experimental.pallas import tpu as pltpu


def _tanh_kernel(x_ref, o_ref):
    # Elementwise tanh on the current VMEM tile.  jnp.tanh lowers to the EUP
    # tanh path; this kernel is HBM-bandwidth bound on v5e/v6e (and on v7x as
    # long as the lowering stays a single EUP pass per vreg).
    o_ref[...] = jnp.tanh(x_ref[...])


_C_CANDIDATES = (16384, 8192, 4096, 2048, 1024, 512, 256, 128)


def _vmem_capacity_bytes() -> int:
    """Best-effort VMEM capacity query; conservative (v7x per-TC) fallback."""
    try:
        return int(pltpu.get_tpu_info().vmem_capacity_bytes)
    except Exception:
        return 64 * 1024 * 1024


def _tanh_flat_aligned(flat: jax.Array) -> jax.Array:
    """tanh of a 1D floating array whose length is a multiple of 128."""
    n = flat.size
    dtype = flat.dtype
    itemsize = jnp.dtype(dtype).itemsize
    # Dtype-aware sublane packing: 8 sublanes for 4-byte, 16 for 2-byte, 32 for 1-byte.
    sub = {4: 8, 2: 16, 1: 32}.get(itemsize, 8)

    # Pick the widest lane-dense C that still leaves >= `sub` rows (full vregs,
    # unmasked stores).  Fall back to divisibility-only for tiny inputs.
    C = None
    for cand in _C_CANDIDATES:
        if n % cand == 0 and (n // cand) >= sub:
            C = cand
            break
    if C is None:
        for cand in _C_CANDIDATES:
            if n % cand == 0:
                C = cand
                break
    assert C is not None  # guaranteed: n is a multiple of 128

    rows = n // C
    x2 = flat.reshape(rows, C)
    row_bytes = C * itemsize

    # VMEM-budget-aware tile size: aggregate for the double-buffered in+out
    # pipeline is 4 x tile; keep it <= min(3/4 of VMEM, 48 MiB) (v7x-safe),
    # and target up to 8 MiB per tile to amortize per-grid-step overhead.
    cap = _vmem_capacity_bytes()
    aggregate_cap = min((cap * 3) // 4, 48 * 1024 * 1024)
    target_tile_bytes = max(2 << 20, min(8 << 20, aggregate_cap // 4))

    tile_r = (target_tile_bytes // row_bytes) // sub * sub
    tile_r = max(sub, tile_r)
    if tile_r >= rows:
        tile_r = rows  # full-extent block is always a legal block shape

    grid_len = pl.cdiv(rows, tile_r)

    # If everything landed in a single block but the array is big enough that
    # the extra grid step is cheap (>=4 MiB), split into two balanced blocks so
    # both v7x TensorCores (per-TC DMA paths) get work via the "parallel" axis.
    if grid_len == 1 and rows >= 2 * sub and rows * row_bytes >= (4 << 20):
        half = pl.cdiv(rows, 2)
        tile_r = pl.cdiv(half, sub) * sub
        grid_len = pl.cdiv(rows, tile_r)

    tile_bytes = tile_r * row_bytes
    vmem_limit = int(min(cap, 4 * tile_bytes + (4 << 20)))
    vmem_limit = max(vmem_limit, 16 << 20)

    out2 = pl.pallas_call(
        _tanh_kernel,
        out_shape=jax.ShapeDtypeStruct((rows, C), dtype),
        grid=(grid_len,),  # ragged last row-block handled by Pallas (safe for elementwise)
        in_specs=[pl.BlockSpec((tile_r, C), lambda i: (i, 0))],
        out_specs=pl.BlockSpec((tile_r, C), lambda i: (i, 0)),
        compiler_params=pltpu.CompilerParams(
            # Single parallel axis: no-op on 1-TC chips, shards blocks across
            # the two TensorCores on v7x.
            dimension_semantics=("parallel",),
            vmem_limit_bytes=vmem_limit,
        ),
        cost_estimate=pl.CostEstimate(
            flops=0, transcendentals=n, bytes_accessed=2 * n * itemsize
        ),
    )(x2)
    return out2.reshape(-1)


def pallas_tanh(x: jax.Array) -> jax.Array:
    """Elementwise tanh via a Pallas TPU kernel (forward of the Tanh module)."""
    orig_shape = x.shape
    if x.size == 0:
        return jnp.tanh(x)

    # torch.tanh promotes integer inputs to float; mirror that instead of
    # truncating a float result into an integer output ref.
    if not jnp.issubdtype(x.dtype, jnp.floating):
        x = x.astype(jnp.float32)

    n = x.size
    flat = x.reshape(-1)

    tail = n % 128
    n_aligned = n - tail

    if n_aligned == 0:
        # <128 elements: a kernel launch is pure overhead.
        return jnp.tanh(flat).reshape(orig_shape)

    if tail == 0:
        out_flat = _tanh_flat_aligned(flat)
    else:
        # 128-aligned prefix through the kernel; tiny (<128 elem) tail in plain
        # JAX.  Avoids the old full-tensor pad + slice round-trip through HBM.
        out_head = _tanh_flat_aligned(flat[:n_aligned])
        out_tail = jnp.tanh(flat[n_aligned:])
        out_flat = jnp.concatenate([out_head, out_tail])

    return out_flat.reshape(orig_shape)


if __name__ == "__main__":
    key = jax.random.PRNGKey(0)
    # Small NCHW-shaped input consistent with a typical conv-net activation.
    x = jax.random.normal(key, (2, 4, 16, 16), dtype=jnp.float32)

    y = pallas_tanh(x)
    jax.block_until_ready(y)

    y_ref = jnp.tanh(x)
    assert y.shape == x.shape and y.dtype == x.dtype
    assert jnp.allclose(y, y_ref, atol=1e-6, rtol=1e-6), "mismatch vs jnp.tanh"

    # Exercise the non-128-divisible path (aligned prefix + tiny tail).
    x_odd = jax.random.normal(jax.random.PRNGKey(1), (7, 13, 5), dtype=jnp.float32)
    y_odd = pallas_tanh(x_odd)
    jax.block_until_ready(y_odd)
    assert jnp.allclose(y_odd, jnp.tanh(x_odd), atol=1e-6, rtol=1e-6)

    # Exercise a bf16 input (2-byte sublane packing path).
    x_bf16 = jax.random.normal(jax.random.PRNGKey(2), (8, 32, 128), dtype=jnp.bfloat16)
    y_bf16 = pallas_tanh(x_bf16)
    jax.block_until_ready(y_bf16)
    assert y_bf16.dtype == jnp.bfloat16
    assert jnp.allclose(
        y_bf16.astype(jnp.float32), jnp.tanh(x_bf16).astype(jnp.float32),
        atol=1e-2, rtol=1e-2,
    )

    # TODO(synk): backward() of the PyTorch module is training-only and is
    # intentionally not implemented here (forward pass only).
    print("KERNEL_OK")
</pallas_src>

<mosaic_0001>
module attributes {stable_mosaic.version = 11 : i64} {
  func.func @_tanh_kernel(%arg0: i32, %arg1: memref<8x256xf32, #tpu.memory_space<vmem>>, %arg2: memref<8x256xf32, #tpu.memory_space<vmem>>) attributes {dimension_semantics = [#tpu.dimension_semantics<parallel>], iteration_bounds = array<i64: 1>, scalar_prefetch = 0 : i64, scratch_operands = 0 : i64, tpu.core_type = #tpu.core_type<tc>, window_params = [{transform_indices = @transform_0, window_bounds = array<i64: 8, 256>}, {transform_indices = @transform_1, window_bounds = array<i64: 8, 256>}]} {
    %c0 = arith.constant 0 : index
    %c0_0 = arith.constant 0 : index
    %0 = vector.load %arg1[%c0, %c0_0] : memref<8x256xf32, #tpu.memory_space<vmem>>, vector<8x256xf32>
    %1 = math.tanh %0 : vector<8x256xf32>
    %c0_1 = arith.constant 0 : index
    %c0_2 = arith.constant 0 : index
    %2 = vector.load %arg2[%c0_1, %c0_2] : memref<8x256xf32, #tpu.memory_space<vmem>>, vector<8x256xf32>
    tpu.vector_store %arg2[%c0_1, %c0_2], %1 {strides = array<i32>} : memref<8x256xf32, #tpu.memory_space<vmem>>, vector<8x256xf32>,
    return
  }
  func.func @transform_0(%arg0: i32) -> (i32, i32) {
    %c0_i32 = arith.constant 0 : i32
    %c0_i32_0 = arith.constant 0 : i32
    return %arg0, %c0_i32 : i32, i32
  }
  func.func @transform_1(%arg0: i32) -> (i32, i32) {
    %c0_i32 = arith.constant 0 : i32
    %c0_i32_0 = arith.constant 0 : i32
    return %arg0, %c0_i32 : i32, i32
  }
}

</mosaic_0001>

<bundles_post_ra>
// kernel: tpu_custom_call.1
= control target key start
LH: loop header
LB: loop body
LE: loop exit
PB: predicated region body
PF: predicated region fallthrough
CT: control target
= control target key end

     0   :  { %6 = vsyncpa [#allocation3], 0  ;;  %s122_s0 = inlined_call_operand.hbm [shape: f32[8,256], index: 0, kind: input, shape index: {}]   ;;  %s123_s1 = inlined_call_operand.hbm [shape: f32[8,256], index: 1, kind: output, shape index: {}]  }
   0x1   :  { %7 = vsyncpa [#allocation4], 0  ;;  %s13_s8 = sshll.u32 %s122_s0, 4  ;;  %s104_s9 = smov [#allocation2]   ;;  %s14_s8 = int_to_ptr.hbm [resolvable:$true] %s13_s8 }
   0x2   :  { %s15_s10 = sshll.u32 %s104_s9, 4  ;;  %s16_s10 = int_to_ptr.vmem [resolvable:$true] %s15_s10 }
   0x3   :  { %18 = dma.hbm_to_vmem [thread:$0]  %s14_s8, 256, %s16_s10, [#allocation3]  }
   0x4   :  { %100 = dma.done.wait [#allocation3], 256  }
   0x5   :  { %101 = vsyncadd [#allocation3], 4294967040  ;;  %v23_v0 = vld [vmem:[#allocation2] sm:$0xff]  ;;  %v24_v1 = vld [vmem:[#allocation2 + $0x8] sm:$0xff]  ;;  %s105_s11 = smov [#allocation5]   ;;  %s36_s15 = sshll.u32 %s123_s1, 4  ;;  %s37_s15 = int_to_ptr.hbm [resolvable:$true] %s36_s15 }
   0x6   :  { %48 = vtanh.f32 %v23_v0  ;;  %s34_s12 = sshll.u32 %s105_s11, 4  ;;  %s35_s12 = int_to_ptr.vmem [resolvable:$true] %s34_s12 }
   0x7   :  { %50 = vtanh.f32 %v24_v1 }
   0xc   :  { %v49_v2 = vpop.eup %48 }
   0xd   :  { %v51_v3 = vpop.eup %50  ;;  %27 = vst [vmem:[#allocation5] sm:$0xff] %v49_v2 }
   0xe   :  { %28 = vst [vmem:[#allocation5 + $0x8] sm:$0xff] %v51_v3 }
   0xf   :  { %39 = dma.vmem_to_hbm [thread:$0]  %s35_s12, 256, %s37_s15, [#allocation4]  }
  0x10   :  { %102 = dma.done.wait [#allocation4], 256  }
  0x11   :  { %103 = vsyncadd [#allocation4], 4294967040 }
  0x12   :  { %44 = vsyncpa [#allocation3], 1 }
  0x13   :  { %45 = vsyncpa [#allocation4], 1 }

</bundles_post_ra>
